<compile_context>
chip_gen: v5e
topology: v5e:2x2
jax: 0.10.0
libtpu: 0.0.40
codegen_flags: <defaults>
</compile_context>

<pallas_src>
import functools

import jax
import jax.numpy as jnp
from jax.experimental import pallas as pl
from jax.experimental.pallas import tpu as pltpu

BN_EPS = 1e-5
LANE = 128
BF16_PACK = 16  # bf16 packs 16 rows per sublane group -> batch tiles are multiples of 16


def _round_up(n, m):
    return ((n + m - 1) // m) * m


def _vmem_caps():
    """(usable VMEM cap, max batch tile) for the local TPU generation."""
    try:
        phys = int(pltpu.get_tpu_info().vmem_capacity_bytes)
    except Exception:
        phys = 64 << 20                       # conservative (v7x-sized) default
    if phys >= (100 << 20):                   # v5e / v6e: 128 MiB physical VMEM
        return 112 << 20, 512
    return 56 << 20, 256                      # v7x: 64 MiB physical -> leave headroom


def _choose_batch_tile(batch, max_tile):
    if batch <= BF16_PACK:
        return BF16_PACK
    # aim for >= 2 batch tiles so the "parallel" axis can shard across v7x's two TensorCores
    return min(max_tile, _round_up(pl.cdiv(batch, 2), BF16_PACK))


# --------------------------------------------------------------------------- kernels
def _mlp_kernel(n_layers, x_ref, *refs):
    """refs = (w0, b0, w1, b1, ..., w_{L-1}, b_{L-1}, o_ref).

    x / inter-layer activations: bf16.  Weights: bf16 (in_p, out_p).  Biases: fp32 (1, out_p).
    MXU accumulates fp32; bias + ReLU epilogue fp32; ReLU after all but the last layer.
    """
    o_ref = refs[-1]
    h = x_ref[...]                                           # bf16 (TB, in_p)

    # Statically unrolled; resident-weight path is gated on fitting VMEM (see wrapper),
    # otherwise the per-layer streaming fallback is used.
    for i in range(n_layers):
        w_ref = refs[2 * i]
        b_ref = refs[2 * i + 1]
        acc = jnp.dot(h, w_ref[...], preferred_element_type=jnp.float32) + b_ref[...]
        if i < n_layers - 1:
            h = jnp.maximum(acc, 0.0).astype(jnp.bfloat16)   # bf16 inter-layer activation
        else:
            o_ref[...] = acc                                 # final layer stays fp32


def _layer_kernel(apply_relu, x_ref, w_ref, b_ref, o_ref):
    """Single Linear(+ReLU) layer for the streamed (per-layer) fallback path."""
    acc = jnp.dot(x_ref[...], w_ref[...], preferred_element_type=jnp.float32) + b_ref[...]
    if apply_relu:
        acc = jnp.maximum(acc, 0.0)
    o_ref[...] = acc.astype(o_ref.dtype)


# --------------------------------------------------------------------------- host-side prep
def _prepare_layers(params, n_hidden):
    """Fold eval-mode BN into hidden Linears, pad to lane multiples, cast weights to bf16.

    Returns a list of (w_bf16 [in_p, out_p], b_f32 [1, out_p]); ReLU follows all but the last.
    """
    layers = [(params["w_in"], params["b_in"])]
    for hp in params["hidden"]:
        scale = hp["gamma"] * jax.lax.rsqrt(hp["rvar"] + BN_EPS)   # (1, H)
        w_f = hp["w"] * scale                                      # scale output columns
        b_f = (hp["b"] - hp["rmean"]) * scale + hp["beta"]
        layers.append((w_f, b_f))
    layers.append((params["w_out"], params["b_out"]))

    padded = []
    for w, b in layers:
        in_p = _round_up(w.shape[0], LANE)
        out_p = _round_up(w.shape[1], LANE)
        w_p = jnp.pad(w, ((0, in_p - w.shape[0]), (0, out_p - w.shape[1]))).astype(jnp.bfloat16)
        b_p = jnp.pad(b, ((0, 0), (0, out_p - b.shape[1]))).astype(jnp.float32)
        padded.append((w_p, b_p))
    return padded


# --------------------------------------------------------------------------- pallas_call runners
def _weight_spec(shape, single_buffer):
    if single_buffer:
        # grid-invariant block -> request a single VMEM buffer (no useless double-buffer)
        return pl.BlockSpec(shape, lambda i: (0, 0), pipeline_mode=pl.Buffered(1))
    return pl.BlockSpec(shape, lambda i: (0, 0))


def _run_fused(x_p, layers, tb, vmem_limit, single_buffer_weights):
    batch_p, in_p = x_p.shape
    out_p = layers[-1][0].shape[1]
    n_layers = len(layers)

    flat_inputs = [x_p]
    in_specs = [pl.BlockSpec((tb, in_p), lambda i: (i, 0))]
    for w, b in layers:
        flat_inputs += [w, b]
        in_specs += [_weight_spec(w.shape, single_buffer_weights),
                     _weight_spec(b.shape, single_buffer_weights)]

    flops = 2 * batch_p * sum(int(w.shape[0]) * int(w.shape[1]) for w, _ in layers)
    param_bytes = sum(int(w.size) * 2 + int(b.size) * 4 for w, b in layers)
    bytes_accessed = int(x_p.size) * 2 + batch_p * out_p * 4 + param_bytes

    return pl.pallas_call(
        functools.partial(_mlp_kernel, n_layers),
        out_shape=jax.ShapeDtypeStruct((batch_p, out_p), jnp.float32),
        grid=(batch_p // tb,),
        in_specs=in_specs,
        out_specs=pl.BlockSpec((tb, out_p), lambda i: (i, 0)),
        compiler_params=pltpu.CompilerParams(
            dimension_semantics=("parallel",),
            vmem_limit_bytes=int(vmem_limit)),
        cost_estimate=pl.CostEstimate(flops=int(flops), transcendentals=0,
                                      bytes_accessed=int(bytes_accessed)),
    )(*flat_inputs)


def _run_layered(x_p, layers, tb, vmem_cap):
    """Fallback when all weights do not fit resident in VMEM: one pallas_call per layer.

    # TODO(synk): replace the per-layer pallas_call chain (activations round-trip HBM) with a
    #             single kernel using an inner "arbitrary" layer grid axis + double-buffered
    #             weight streaming, to overlap weight DMA with the previous layer's matmul.
    """
    batch_p = x_p.shape[0]
    h = x_p
    n_layers = len(layers)
    for li, (w, b) in enumerate(layers):
        last = li == n_layers - 1
        out_dtype = jnp.float32 if last else jnp.bfloat16
        in_p, out_p = int(w.shape[0]), int(w.shape[1])
        out_bytes = 4 if last else 2
        tile_bytes = 2 * (tb * in_p * 2 + tb * out_p * out_bytes)
        layer_bytes = int(w.size) * 2 + int(b.size) * 4
        vmem_limit = int(min(max(2 * layer_bytes + tile_bytes + (4 << 20), 32 << 20), vmem_cap))
        h = pl.pallas_call(
            functools.partial(_layer_kernel, not last),
            out_shape=jax.ShapeDtypeStruct((batch_p, out_p), out_dtype),
            grid=(batch_p // tb,),
            in_specs=[pl.BlockSpec((tb, in_p), lambda i: (i, 0)),
                      pl.BlockSpec(w.shape, lambda i: (0, 0)),
                      pl.BlockSpec(b.shape, lambda i: (0, 0))],
            out_specs=pl.BlockSpec((tb, out_p), lambda i: (i, 0)),
            compiler_params=pltpu.CompilerParams(
                dimension_semantics=("parallel",),
                vmem_limit_bytes=vmem_limit),
        )(h, w, b)
    return h


# --------------------------------------------------------------------------- forward
def neural_network_forward(x, params, n_hidden):
    """Eval-mode forward via a batch-tiled Pallas kernel (resident-weight or layer-streamed)."""
    layers = _prepare_layers(params, n_hidden)
    batch, in_features = x.shape
    output_size = params["w_out"].shape[1]
    in_p = layers[0][0].shape[0]
    out_p = layers[-1][0].shape[1]

    vmem_cap, max_tile = _vmem_caps()
    tb = _choose_batch_tile(batch, max_tile)
    batch_p = _round_up(batch, tb)

    # Pad + pre-cast to bf16 on the host (the kernel consumes the LHS in bf16 anyway):
    # halves the streamed x DMA and its double-buffered VMEM tile.
    x_p = jnp.pad(x.astype(jnp.float32),
                  ((0, batch_p - batch), (0, in_p - in_features))).astype(jnp.bfloat16)

    param_bytes = sum(int(w.size) * 2 + int(b.size) * 4 for w, b in layers)
    max_width = max(int(w.shape[1]) for w, _ in layers)
    tile_bytes = 2 * (tb * in_p * 2 + tb * out_p * 4)      # double-buffered x (bf16) / out (fp32)
    act_bytes = tb * max_width * (4 + 2)                   # fp32 accumulator + bf16 activation
    fused_bytes = param_bytes + tile_bytes + act_bytes + (6 << 20)

    if fused_bytes <= vmem_cap:
        # headroom in case the compiler still double-buffers the resident weights
        vmem_limit = min(max(fused_bytes + param_bytes, 32 << 20), vmem_cap)
        try:
            out_padded = _run_fused(x_p, layers, tb, vmem_limit, single_buffer_weights=True)
        except Exception:
            # pipeline_mode=pl.Buffered(1) not supported on this jax version -> default buffering
            out_padded = _run_fused(x_p, layers, tb, vmem_limit, single_buffer_weights=False)
    else:
        out_padded = _run_layered(x_p, layers, tb, vmem_cap)

    return out_padded[:batch, :output_size]


# --------------------------------------------------------------------------- params / references
def init_params(key, input_size, hidden_size, output_size, n_hidden):
    """Deterministic PyTorch-style init (U(-1/sqrt(fan_in), 1/sqrt(fan_in))) + non-trivial BN stats."""

    def linear(k, fan_in, fan_out):
        kw, kb = jax.random.split(k)
        bound = 1.0 / jnp.sqrt(fan_in)
        w = jax.random.uniform(kw, (fan_in, fan_out), jnp.float32, -bound, bound)  # (in, out)
        b = jax.random.uniform(kb, (1, fan_out), jnp.float32, -bound, bound)
        return w, b

    keys = jax.random.split(key, n_hidden + 2)
    w_in, b_in = linear(keys[0], input_size, hidden_size)

    hidden = []
    for i in range(n_hidden):
        kl, kg, kb2, km, kv = jax.random.split(keys[1 + i], 5)
        w, b = linear(kl, hidden_size, hidden_size)
        hidden.append(dict(
            w=w, b=b,
            gamma=1.0 + 0.1 * jax.random.uniform(kg, (1, hidden_size), jnp.float32),
            beta=0.05 * jax.random.normal(kb2, (1, hidden_size), jnp.float32),
            rmean=0.1 * jax.random.normal(km, (1, hidden_size), jnp.float32),
            rvar=jax.random.uniform(kv, (1, hidden_size), jnp.float32, 0.5, 1.5),
        ))

    w_out, b_out = linear(keys[-1], hidden_size, output_size)
    return dict(w_in=w_in, b_in=b_in, hidden=hidden, w_out=w_out, b_out=b_out)


def reference_forward(x, params, n_hidden):
    """Pure-JAX mirror of exactly what the kernel computes (folded BN, bf16 weights+activations)."""
    layers = _prepare_layers(params, n_hidden)
    in_p = layers[0][0].shape[0]
    h = jnp.pad(x.astype(jnp.float32),
                ((0, 0), (0, in_p - x.shape[1]))).astype(jnp.bfloat16)
    for i, (w, b) in enumerate(layers):
        acc = jnp.dot(h, w, preferred_element_type=jnp.float32) + b
        if i < len(layers) - 1:
            h = jnp.maximum(acc, 0.0).astype(jnp.bfloat16)
        else:
            h = acc
    return h[:, :params["w_out"].shape[1]]


def reference_forward_fp32(x, params):
    """Full-precision eval-mode reference (un-folded BN) for semantic sanity."""
    h = jnp.maximum(x @ params["w_in"] + params["b_in"], 0.0)
    for hp in params["hidden"]:
        h = h @ hp["w"] + hp["b"]
        h = (h - hp["rmean"]) / jnp.sqrt(hp["rvar"] + BN_EPS) * hp["gamma"] + hp["beta"]
        h = jnp.maximum(h, 0.0)
    return h @ params["w_out"] + params["b_out"]


# --------------------------------------------------------------------------- demo
if __name__ == "__main__":
    batch = 8
    input_size = 32
    hidden_size = 32
    output_size = 8
    n_hidden = 2

    key = jax.random.PRNGKey(0)
    kx, kp = jax.random.split(key)
    x = jax.random.normal(kx, (batch, input_size), jnp.float32)
    params = init_params(kp, input_size, hidden_size, output_size, n_hidden)

    out = jax.block_until_ready(neural_network_forward(x, params, n_hidden))
    assert out.shape == (batch, output_size)

    # exact numerical mirror (folded BN, bf16 weights/activations) -> tight tolerance
    ref = reference_forward(x, params, n_hidden)
    assert jnp.allclose(out, ref, atol=2e-3, rtol=2e-3), "mismatch vs bf16 JAX reference"

    # full fp32 eval-mode semantics of the nn.Module -> loose tolerance (bf16 quantization)
    ref32 = reference_forward_fp32(x, params)
    assert jnp.allclose(out, ref32, atol=1e-1, rtol=1e-1), "mismatch vs fp32 reference"

    print("KERNEL_OK")
</pallas_src>

<mosaic_0001>
module attributes {stable_mosaic.version = 11 : i64} {
  func.func @_mlp_kernel(%arg0: i32, %arg1: memref<16x128xbf16, #tpu.memory_space<vmem>>, %arg2: memref<128x128xbf16, #tpu.memory_space<vmem>>, %arg3: memref<1x128xf32, #tpu.memory_space<vmem>>, %arg4: memref<128x128xbf16, #tpu.memory_space<vmem>>, %arg5: memref<1x128xf32, #tpu.memory_space<vmem>>, %arg6: memref<128x128xbf16, #tpu.memory_space<vmem>>, %arg7: memref<1x128xf32, #tpu.memory_space<vmem>>, %arg8: memref<128x128xbf16, #tpu.memory_space<vmem>>, %arg9: memref<1x128xf32, #tpu.memory_space<vmem>>, %arg10: memref<16x128xf32, #tpu.memory_space<vmem>>) attributes {dimension_semantics = [#tpu.dimension_semantics<parallel>], iteration_bounds = array<i64: 1>, scalar_prefetch = 0 : i64, scratch_operands = 0 : i64, tpu.core_type = #tpu.core_type<tc>, window_params = [{transform_indices = @transform_0, window_bounds = array<i64: 16, 128>}, {pipeline_mode = #tpu.pipeline_mode<synchronous>, transform_indices = @transform_1, window_bounds = array<i64: 128, 128>}, {pipeline_mode = #tpu.pipeline_mode<synchronous>, transform_indices = @transform_2, window_bounds = array<i64: 1, 128>}, {pipeline_mode = #tpu.pipeline_mode<synchronous>, transform_indices = @transform_3, window_bounds = array<i64: 128, 128>}, {pipeline_mode = #tpu.pipeline_mode<synchronous>, transform_indices = @transform_4, window_bounds = array<i64: 1, 128>}, {pipeline_mode = #tpu.pipeline_mode<synchronous>, transform_indices = @transform_5, window_bounds = array<i64: 128, 128>}, {pipeline_mode = #tpu.pipeline_mode<synchronous>, transform_indices = @transform_6, window_bounds = array<i64: 1, 128>}, {pipeline_mode = #tpu.pipeline_mode<synchronous>, transform_indices = @transform_7, window_bounds = array<i64: 128, 128>}, {pipeline_mode = #tpu.pipeline_mode<synchronous>, transform_indices = @transform_8, window_bounds = array<i64: 1, 128>}, {transform_indices = @transform_9, window_bounds = array<i64: 16, 128>}]} {
    %c0 = arith.constant 0 : index
    %c0_0 = arith.constant 0 : index
    %0 = vector.load %arg1[%c0, %c0_0] : memref<16x128xbf16, #tpu.memory_space<vmem>>, vector<16x128xbf16>
    %c0_1 = arith.constant 0 : index
    %c0_2 = arith.constant 0 : index
    %1 = vector.load %arg2[%c0_1, %c0_2] : memref<128x128xbf16, #tpu.memory_space<vmem>>, vector<128x128xbf16>
    %cst = arith.constant dense<0.000000e+00> : vector<16x128xf32>
    %2 = tpu.matmul %0, %1, %cst {dimension_numbers = #tpu.dot_dimension_numbers<[1], [0], [0], [1], [0, 0, 1, 1], [], []>} : vector<16x128xbf16>, vector<128x128xbf16>, vector<16x128xf32> -> vector<16x128xf32>
    %c0_3 = arith.constant 0 : index
    %c0_4 = arith.constant 0 : index
    %3 = vector.load %arg3[%c0_3, %c0_4] : memref<1x128xf32, #tpu.memory_space<vmem>>, vector<1x128xf32>
    %4 = vector.broadcast %3 : vector<1x128xf32> to vector<16x128xf32>
    %5 = arith.addf %2, %4 : vector<16x128xf32>
    %cst_5 = arith.constant 0.000000e+00 : f32
    %6 = vector.broadcast %cst_5 : f32 to vector<16x128xf32>
    %7 = arith.maximumf %5, %6 : vector<16x128xf32>
    %8 = arith.truncf %7 : vector<16x128xf32> to vector<16x128xbf16>
    %c0_6 = arith.constant 0 : index
    %c0_7 = arith.constant 0 : index
    %9 = vector.load %arg4[%c0_6, %c0_7] : memref<128x128xbf16, #tpu.memory_space<vmem>>, vector<128x128xbf16>
    %cst_8 = arith.constant dense<0.000000e+00> : vector<16x128xf32>
    %10 = tpu.matmul %8, %9, %cst_8 {dimension_numbers = #tpu.dot_dimension_numbers<[1], [0], [0], [1], [0, 0, 1, 1], [], []>} : vector<16x128xbf16>, vector<128x128xbf16>, vector<16x128xf32> -> vector<16x128xf32>
    %c0_9 = arith.constant 0 : index
    %c0_10 = arith.constant 0 : index
    %11 = vector.load %arg5[%c0_9, %c0_10] : memref<1x128xf32, #tpu.memory_space<vmem>>, vector<1x128xf32>
    %12 = vector.broadcast %11 : vector<1x128xf32> to vector<16x128xf32>
    %13 = arith.addf %10, %12 : vector<16x128xf32>
    %cst_11 = arith.constant 0.000000e+00 : f32
    %14 = vector.broadcast %cst_11 : f32 to vector<16x128xf32>
    %15 = arith.maximumf %13, %14 : vector<16x128xf32>
    %16 = arith.truncf %15 : vector<16x128xf32> to vector<16x128xbf16>
    %c0_12 = arith.constant 0 : index
    %c0_13 = arith.constant 0 : index
    %17 = vector.load %arg6[%c0_12, %c0_13] : memref<128x128xbf16, #tpu.memory_space<vmem>>, vector<128x128xbf16>
    %cst_14 = arith.constant dense<0.000000e+00> : vector<16x128xf32>
    %18 = tpu.matmul %16, %17, %cst_14 {dimension_numbers = #tpu.dot_dimension_numbers<[1], [0], [0], [1], [0, 0, 1, 1], [], []>} : vector<16x128xbf16>, vector<128x128xbf16>, vector<16x128xf32> -> vector<16x128xf32>
    %c0_15 = arith.constant 0 : index
    %c0_16 = arith.constant 0 : index
    %19 = vector.load %arg7[%c0_15, %c0_16] : memref<1x128xf32, #tpu.memory_space<vmem>>, vector<1x128xf32>
    %20 = vector.broadcast %19 : vector<1x128xf32> to vector<16x128xf32>
    %21 = arith.addf %18, %20 : vector<16x128xf32>
    %cst_17 = arith.constant 0.000000e+00 : f32
    %22 = vector.broadcast %cst_17 : f32 to vector<16x128xf32>
    %23 = arith.maximumf %21, %22 : vector<16x128xf32>
    %24 = arith.truncf %23 : vector<16x128xf32> to vector<16x128xbf16>
    %c0_18 = arith.constant 0 : index
    %c0_19 = arith.constant 0 : index
    %25 = vector.load %arg8[%c0_18, %c0_19] : memref<128x128xbf16, #tpu.memory_space<vmem>>, vector<128x128xbf16>
    %cst_20 = arith.constant dense<0.000000e+00> : vector<16x128xf32>
    %26 = tpu.matmul %24, %25, %cst_20 {dimension_numbers = #tpu.dot_dimension_numbers<[1], [0], [0], [1], [0, 0, 1, 1], [], []>} : vector<16x128xbf16>, vector<128x128xbf16>, vector<16x128xf32> -> vector<16x128xf32>
    %c0_21 = arith.constant 0 : index
    %c0_22 = arith.constant 0 : index
    %27 = vector.load %arg9[%c0_21, %c0_22] : memref<1x128xf32, #tpu.memory_space<vmem>>, vector<1x128xf32>
    %28 = vector.broadcast %27 : vector<1x128xf32> to vector<16x128xf32>
    %29 = arith.addf %26, %28 : vector<16x128xf32>
    %c0_23 = arith.constant 0 : index
    %c0_24 = arith.constant 0 : index
    %30 = vector.load %arg10[%c0_23, %c0_24] : memref<16x128xf32, #tpu.memory_space<vmem>>, vector<16x128xf32>
    tpu.vector_store %arg10[%c0_23, %c0_24], %29 {strides = array<i32>} : memref<16x128xf32, #tpu.memory_space<vmem>>, vector<16x128xf32>,
    return
  }
  func.func @transform_0(%arg0: i32) -> (i32, i32) {
    %c0_i32 = arith.constant 0 : i32
    %c0_i32_0 = arith.constant 0 : i32
    return %arg0, %c0_i32 : i32, i32
  }
  func.func @transform_1(%arg0: i32) -> (i32, i32) {
    %c0_i32 = arith.constant 0 : i32
    %c0_i32_0 = arith.constant 0 : i32
    %c0_i32_1 = arith.constant 0 : i32
    return %c0_i32, %c0_i32_0 : i32, i32
  }
  func.func @transform_2(%arg0: i32) -> (i32, i32) {
    %c0_i32 = arith.constant 0 : i32
    %c0_i32_0 = arith.constant 0 : i32
    %c0_i32_1 = arith.constant 0 : i32
    return %c0_i32, %c0_i32_0 : i32, i32
  }
  func.func @transform_3(%arg0: i32) -> (i32, i32) {
    %c0_i32 = arith.constant 0 : i32
    %c0_i32_0 = arith.constant 0 : i32
    %c0_i32_1 = arith.constant 0 : i32
    return %c0_i32, %c0_i32_0 : i32, i32
  }
  func.func @transform_4(%arg0: i32) -> (i32, i32) {
    %c0_i32 = arith.constant 0 : i32
    %c0_i32_0 = arith.constant 0 : i32
    %c0_i32_1 = arith.constant 0 : i32
    return %c0_i32, %c0_i32_0 : i32, i32
  }
  func.func @transform_5(%arg0: i32) -> (i32, i32) {
    %c0_i32 = arith.constant 0 : i32
    %c0_i32_0 = arith.constant 0 : i32
    %c0_i32_1 = arith.constant 0 : i32
    return %c0_i32, %c0_i32_0 : i32, i32
  }
  func.func @transform_6(%arg0: i32) -> (i32, i32) {
    %c0_i32 = arith.constant 0 : i32
    %c0_i32_0 = arith.constant 0 : i32
    %c0_i32_1 = arith.constant 0 : i32
    return %c0_i32, %c0_i32_0 : i32, i32
  }
  func.func @transform_7(%arg0: i32) -> (i32, i32) {
    %c0_i32 = arith.constant 0 : i32
    %c0_i32_0 = arith.constant 0 : i32
    %c0_i32_1 = arith.constant 0 : i32
    return %c0_i32, %c0_i32_0 : i32, i32
  }
  func.func @transform_8(%arg0: i32) -> (i32, i32) {
    %c0_i32 = arith.constant 0 : i32
    %c0_i32_0 = arith.constant 0 : i32
    %c0_i32_1 = arith.constant 0 : i32
    return %c0_i32, %c0_i32_0 : i32, i32
  }
  func.func @transform_9(%arg0: i32) -> (i32, i32) {
    %c0_i32 = arith.constant 0 : i32
    %c0_i32_0 = arith.constant 0 : i32
    return %arg0, %c0_i32 : i32, i32
  }
}

module attributes {stable_mosaic.version = 11 : i64} {
  func.func @_mlp_kernel(%arg0: i32, %arg1: memref<16x128xbf16, #tpu.memory_space<vmem>>, %arg2: memref<128x128xbf16, #tpu.memory_space<vmem>>, %arg3: memref<1x128xf32, #tpu.memory_space<vmem>>, %arg4: memref<128x128xbf16, #tpu.memory_space<vmem>>, %arg5: memref<1x128xf32, #tpu.memory_space<vmem>>, %arg6: memref<128x128xbf16, #tpu.memory_space<vmem>>, %arg7: memref<1x128xf32, #tpu.memory_space<vmem>>, %arg8: memref<128x128xbf16, #tpu.memory_space<vmem>>, %arg9: memref<1x128xf32, #tpu.memory_space<vmem>>, %arg10: memref<16x128xf32, #tpu.memory_space<vmem>>) attributes {dimension_semantics = [#tpu.dimension_semantics<parallel>], iteration_bounds = array<i64: 1>, scalar_prefetch = 0 : i64, scratch_operands = 0 : i64, tpu.core_type = #tpu.core_type<tc>, window_params = [{transform_indices = @transform_0, window_bounds = array<i64: 16, 128>}, {pipeline_mode = #tpu.pipeline_mode<synchronous>, transform_indices = @transform_1, window_bounds = array<i64: 128, 128>}, {pipeline_mode = #tpu.pipeline_mode<synchronous>, transform_indices = @transform_2, window_bounds = array<i64: 1, 128>}, {pipeline_mode = #tpu.pipeline_mode<synchronous>, transform_indices = @transform_3, window_bounds = array<i64: 128, 128>}, {pipeline_mode = #tpu.pipeline_mode<synchronous>, transform_indices = @transform_4, window_bounds = array<i64: 1, 128>}, {pipeline_mode = #tpu.pipeline_mode<synchronous>, transform_indices = @transform_5, window_bounds = array<i64: 128, 128>}, {pipeline_mode = #tpu.pipeline_mode<synchronous>, transform_indices = @transform_6, window_bounds = array<i64: 1, 128>}, {pipeline_mode = #tpu.pipeline_mode<synchronous>, transform_indices = @transform_7, window_bounds = array<i64: 128, 128>}, {pipeline_mode = #tpu.pipeline_mode<synchronous>, transform_indices = @transform_8, window_bounds = array<i64: 1, 128>}, {transform_indices = @transform_9, window_bounds = array<i64: 16, 128>}]} {
    %c0 = arith.constant 0 : index
    %c0_0 = arith.constant 0 : index
    %0 = vector.load %arg1[%c0, %c0_0] : memref<16x128xbf16, #tpu.memory_space<vmem>>, vector<16x128xbf16>
    %c0_1 = arith.constant 0 : index
    %c0_2 = arith.constant 0 : index
    %1 = vector.load %arg2[%c0_1, %c0_2] : memref<128x128xbf16, #tpu.memory_space<vmem>>, vector<128x128xbf16>
    %cst = arith.constant dense<0.000000e+00> : vector<16x128xf32>
    %2 = tpu.matmul %0, %1, %cst {dimension_numbers = #tpu.dot_dimension_numbers<[1], [0], [0], [1], [0, 0, 1, 1], [], []>} : vector<16x128xbf16>, vector<128x128xbf16>, vector<16x128xf32> -> vector<16x128xf32>
    %c0_3 = arith.constant 0 : index
    %c0_4 = arith.constant 0 : index
    %3 = vector.load %arg3[%c0_3, %c0_4] : memref<1x128xf32, #tpu.memory_space<vmem>>, vector<1x128xf32>
    %4 = vector.broadcast %3 : vector<1x128xf32> to vector<16x128xf32>
    %5 = arith.addf %2, %4 : vector<16x128xf32>
    %cst_5 = arith.constant 0.000000e+00 : f32
    %6 = vector.broadcast %cst_5 : f32 to vector<16x128xf32>
    %7 = arith.maximumf %5, %6 : vector<16x128xf32>
    %8 = arith.truncf %7 : vector<16x128xf32> to vector<16x128xbf16>
    %c0_6 = arith.constant 0 : index
    %c0_7 = arith.constant 0 : index
    %9 = vector.load %arg4[%c0_6, %c0_7] : memref<128x128xbf16, #tpu.memory_space<vmem>>, vector<128x128xbf16>
    %cst_8 = arith.constant dense<0.000000e+00> : vector<16x128xf32>
    %10 = tpu.matmul %8, %9, %cst_8 {dimension_numbers = #tpu.dot_dimension_numbers<[1], [0], [0], [1], [0, 0, 1, 1], [], []>} : vector<16x128xbf16>, vector<128x128xbf16>, vector<16x128xf32> -> vector<16x128xf32>
    %c0_9 = arith.constant 0 : index
    %c0_10 = arith.constant 0 : index
    %11 = vector.load %arg5[%c0_9, %c0_10] : memref<1x128xf32, #tpu.memory_space<vmem>>, vector<1x128xf32>
    %12 = vector.broadcast %11 : vector<1x128xf32> to vector<16x128xf32>
    %13 = arith.addf %10, %12 : vector<16x128xf32>
    %cst_11 = arith.constant 0.000000e+00 : f32
    %14 = vector.broadcast %cst_11 : f32 to vector<16x128xf32>
    %15 = arith.maximumf %13, %14 : vector<16x128xf32>
    %16 = arith.truncf %15 : vector<16x128xf32> to vector<16x128xbf16>
    %c0_12 = arith.constant 0 : index
    %c0_13 = arith.constant 0 : index
    %17 = vector.load %arg6[%c0_12, %c0_13] : memref<128x128xbf16, #tpu.memory_space<vmem>>, vector<128x128xbf16>
    %cst_14 = arith.constant dense<0.000000e+00> : vector<16x128xf32>
    %18 = tpu.matmul %16, %17, %cst_14 {dimension_numbers = #tpu.dot_dimension_numbers<[1], [0], [0], [1], [0, 0, 1, 1], [], []>} : vector<16x128xbf16>, vector<128x128xbf16>, vector<16x128xf32> -> vector<16x128xf32>
    %c0_15 = arith.constant 0 : index
    %c0_16 = arith.constant 0 : index
    %19 = vector.load %arg7[%c0_15, %c0_16] : memref<1x128xf32, #tpu.memory_space<vmem>>, vector<1x128xf32>
    %20 = vector.broadcast %19 : vector<1x128xf32> to vector<16x128xf32>
    %21 = arith.addf %18, %20 : vector<16x128xf32>
    %cst_17 = arith.constant 0.000000e+00 : f32
    %22 = vector.broadcast %cst_17 : f32 to vector<16x128xf32>
    %23 = arith.maximumf %21, %22 : vector<16x128xf32>
    %24 = arith.truncf %23 : vector<16x128xf32> to vector<16x128xbf16>
    %c0_18 = arith.constant 0 : index
    %c0_19 = arith.constant 0 : index
    %25 = vector.load %arg8[%c0_18, %c0_19] : memref<128x128xbf16, #tpu.memory_space<vmem>>, vector<128x128xbf16>
    %cst_20 = arith.constant dense<0.000000e+00> : vector<16x128xf32>
    %26 = tpu.matmul %24, %25, %cst_20 {dimension_numbers = #tpu.dot_dimension_numbers<[1], [0], [0], [1], [0, 0, 1, 1], [], []>} : vector<16x128xbf16>, vector<128x128xbf16>, vector<16x128xf32> -> vector<16x128xf32>
    %c0_21 = arith.constant 0 : index
    %c0_22 = arith.constant 0 : index
    %27 = vector.load %arg9[%c0_21, %c0_22] : memref<1x128xf32, #tpu.memory_space<vmem>>, vector<1x128xf32>
    %28 = vector.broadcast %27 : vector<1x128xf32> to vector<16x128xf32>
    %29 = arith.addf %26, %28 : vector<16x128xf32>
    %c0_23 = arith.constant 0 : index
    %c0_24 = arith.constant 0 : index
    %30 = vector.load %arg10[%c0_23, %c0_24] : memref<16x128xf32, #tpu.memory_space<vmem>>, vector<16x128xf32>
    tpu.vector_store %arg10[%c0_23, %c0_24], %29 {strides = array<i32>} : memref<16x128xf32, #tpu.memory_space<vmem>>, vector<16x128xf32>,
    return
  }
  func.func @transform_0(%arg0: i32) -> (i32, i32) {
    %c0_i32 = arith.constant 0 : i32
    %c0_i32_0 = arith.constant 0 : i32
    return %arg0, %c0_i32 : i32, i32
  }
  func.func @transform_1(%arg0: i32) -> (i32, i32) {
    %c0_i32 = arith.constant 0 : i32
    %c0_i32_0 = arith.constant 0 : i32
    %c0_i32_1 = arith.constant 0 : i32
    return %c0_i32, %c0_i32_0 : i32, i32
  }
  func.func @transform_2(%arg0: i32) -> (i32, i32) {
    %c0_i32 = arith.constant 0 : i32
    %c0_i32_0 = arith.constant 0 : i32
    %c0_i32_1 = arith.constant 0 : i32
    return %c0_i32, %c0_i32_0 : i32, i32
  }
  func.func @transform_3(%arg0: i32) -> (i32, i32) {
    %c0_i32 = arith.constant 0 : i32
    %c0_i32_0 = arith.constant 0 : i32
    %c0_i32_1 = arith.constant 0 : i32
    return %c0_i32, %c0_i32_0 : i32, i32
  }
  func.func @transform_4(%arg0: i32) -> (i32, i32) {
    %c0_i32 = arith.constant 0 : i32
    %c0_i32_0 = arith.constant 0 : i32
    %c0_i32_1 = arith.constant 0 : i32
    return %c0_i32, %c0_i32_0 : i32, i32
  }
  func.func @transform_5(%arg0: i32) -> (i32, i32) {
    %c0_i32 = arith.constant 0 : i32
    %c0_i32_0 = arith.constant 0 : i32
    %c0_i32_1 = arith.constant 0 : i32
    return %c0_i32, %c0_i32_0 : i32, i32
  }
  func.func @transform_6(%arg0: i32) -> (i32, i32) {
    %c0_i32 = arith.constant 0 : i32
    %c0_i32_0 = arith.constant 0 : i32
    %c0_i32_1 = arith.constant 0 : i32
    return %c0_i32, %c0_i32_0 : i32, i32
  }
  func.func @transform_7(%arg0: i32) -> (i32, i32) {
    %c0_i32 = arith.constant 0 : i32
    %c0_i32_0 = arith.constant 0 : i32
    %c0_i32_1 = arith.constant 0 : i32
    return %c0_i32, %c0_i32_0 : i32, i32
  }
  func.func @transform_8(%arg0: i32) -> (i32, i32) {
    %c0_i32 = arith.constant 0 : i32
    %c0_i32_0 = arith.constant 0 : i32
    %c0_i32_1 = arith.constant 0 : i32
    return %c0_i32, %c0_i32_0 : i32, i32
  }
  func.func @transform_9(%arg0: i32) -> (i32, i32) {
    %c0_i32 = arith.constant 0 : i32
    %c0_i32_0 = arith.constant 0 : i32
    return %arg0, %c0_i32 : i32, i32
  }
}

</mosaic_0001>

<bundles_post_ra>
// kernel: tpu_custom_call.1
= control target key start
LH: loop header
LB: loop body
LE: loop exit
PB: predicated region body
PF: predicated region fallthrough
CT: control target
= control target key end

     0   :  { %14 = vsyncpa [#allocation3], 0  ;;  %s900_s0 = inlined_call_operand.hbm [shape: bf16[16,128], index: 0, kind: input, shape index: {}]   ;;  %s901_s1 = inlined_call_operand.hbm [shape: bf16[128,128], index: 1, kind: input, shape index: {}]   ;;  %s902_s2 = inlined_call_operand.vmem [shape: f32[1,128], index: 2, kind: input, shape index: {}]   ;;  %s903_s3 = inlined_call_operand.hbm [shape: bf16[128,128], index: 3, kind: input, shape index: {}]   ;;  %s904_s4 = inlined_call_operand.vmem [shape: f32[1,128], index: 4, kind: input, shape index: {}]   ;;  %s905_s5 = inlined_call_operand.hbm [shape: bf16[128,128], index: 5, kind: input, shape index: {}]   ;;  %s906_s6 = inlined_call_operand.vmem [shape: f32[1,128], index: 6, kind: input, shape index: {}]   ;;  %s907_s7 = inlined_call_operand.hbm [shape: bf16[128,128], index: 7, kind: input, shape index: {}]   ;;  %s908_s8 = inlined_call_operand.vmem [shape: f32[1,128], index: 8, kind: input, shape index: {}]   ;;  %s909_s9 = inlined_call_operand.hbm [shape: f32[16,128], index: 9, kind: output, shape index: {}]  }
   0x1   :  { %15 = vsyncpa [#allocation6], 0 }
   0x2   :  { %16 = vsyncpa [#allocation9], 0 }
   0x3   :  { %17 = vsyncpa [#allocation4], 0  ;;  %s35_s11 = sshll.u32 %s901_s1, 4  ;;  %s810_s12 = smov [#allocation5]   ;;  %s36_s11 = int_to_ptr.hbm [resolvable:$true] %s35_s11 }
   0x4   :  { %s37_s13 = sshll.u32 %s810_s12, 4  ;;  %s65_s16 = sshll.u32 %s905_s5, 4  ;;  %s38_s13 = int_to_ptr.vmem [resolvable:$true] %s37_s13  ;;  %s66_s16 = int_to_ptr.hbm [resolvable:$true] %s65_s16 }
   0x5   :  { %s811_s17 = smov 64   ;;  %s812_s18 = smov 4  }
   0x6   :  { %43 = dma.hbm_to_vmem [thread:$0]  %s36_s11, 1024, %s38_s13, [#allocation6], %s811_s17, %s811_s17, %s812_s18  }
   0x7   :  { %s813_s19 = smov [#allocation8]   ;;  %s22_s23 = sshll.u32 %s900_s0, 4  ;;  %s23_s23 = int_to_ptr.hbm [resolvable:$true] %s22_s23 }
   0x8   :  { %s67_s20 = sshll.u32 %s813_s19, 4  ;;  %s50_s25 = sshll.u32 %s903_s3, 4  ;;  %s68_s20 = int_to_ptr.vmem [resolvable:$true] %s67_s20  ;;  %s51_s25 = int_to_ptr.hbm [resolvable:$true] %s50_s25 }
   0x9   :  { %73 = dma.hbm_to_vmem [thread:$0]  %s66_s16, 1024, %s68_s20, [#allocation9], %s811_s17, %s811_s17, %s812_s18  }
   0xa   :  { %s814_s26 = smov [#allocation2]   ;;  %s815_s5 = smov [#allocation7]  }
   0xb   :  { %s24_s27 = sshll.u32 %s814_s26, 4  ;;  %s52_s28 = sshll.u32 %s815_s5, 4  ;;  %s25_s27 = int_to_ptr.vmem [resolvable:$true] %s24_s27  ;;  %s53_s28 = int_to_ptr.vmem [resolvable:$true] %s52_s28 }
   0xc   :  { %30 = dma.hbm_to_vmem [thread:$0]  %s23_s23, 128, %s25_s27, [#allocation3], %s811_s17, %s811_s17, %s812_s18  }
   0xd   :  { %s80_s10 = sshll.u32 %s907_s7, 4  ;;  %s816_s0 = smov [#allocation10]   ;;  %s81_s10 = int_to_ptr.hbm [resolvable:$true] %s80_s10 }
   0xe   :  { %58 = dma.hbm_to_vmem [thread:$0]  %s51_s25, 1024, %s53_s28, [#allocation6], %s811_s17, %s811_s17, %s812_s18  }
   0xf   :  { %s82_s11 = sshll.u32 %s816_s0, 4  ;;  %s83_s11 = int_to_ptr.vmem [resolvable:$true] %s82_s11 }
  0x10   :  { %88 = dma.hbm_to_vmem [thread:$0]  %s81_s10, 1024, %s83_s11, [#allocation9], %s811_s17, %s811_s17, %s812_s18  }
  0x11   :  { %802 = dma.done.wait [#allocation3], 128  }
  0x12   :  { %803 = vsyncadd [#allocation3], 4294967168 }
  0x13   :  { %804 = dma.done.wait [#allocation6], 2048  }
  0x14   :  { %805 = vsyncadd [#allocation6], 4294965248 }
  0x15   :  { %806 = dma.done.wait [#allocation9], 2048  }
  0x16   :  { %807 = vsyncadd [#allocation9], 4294965248  ;;  %v619_v0 = vld [vmem:[#allocation5 + $0x38] sm:$0xff]  ;;  %v618_v1 = vld [vmem:[#allocation5 + $0x30] sm:$0xff]  ;;  %s817_s16 = smov [#allocation11]   ;;  %s818_s20 = smov 128  }
  0x17   :  { %187 = vmatpush.bf16.msra.mxu0 %v619_v0  ;;  %v627_v2 = vld [vmem:[#allocation7 + $0x38] sm:$0xff]  ;;  %v626_v3 = vld [vmem:[#allocation7 + $0x30] sm:$0xff]  ;;  %v617_v4 = vld [vmem:[#allocation5 + $0x28] sm:$0xff]  ;;  %s462_s17 = sshll.u32 %s817_s16, 4  ;;  %s819_s21 = smov 8   ;;  %s463_s17 = int_to_ptr.vmem [resolvable:$true] %s462_s17 }
  0x18   :  { %272 = vmatpush.bf16.msra.mxu1 %v627_v2  ;;  %v625_v5 = vld [vmem:[#allocation7 + $0x28] sm:$0xff]  ;;  %v616_v6 = vld [vmem:[#allocation5 + $0x20] sm:$0xff]  ;;  %v615_v8 = vld [vmem:[#allocation5 + $0x18] sm:$0xff] }
  0x19   :  { %v624_v7 = vld [vmem:[#allocation7 + $0x20] sm:$0xff]  ;;  %v614_v9 = vld [vmem:[#allocation5 + $0x10] sm:$0xff]  ;;  %v613_v10 = vld [vmem:[#allocation5 + $0x8] sm:$0xff] }
  0x1a   :  { %v612_v11 = vld [vmem:[#allocation5] sm:$0xff]  ;;  %v611_v12 = vld [vmem:[#allocation2] sm:$0xff]  ;;  %v622_v14 = vld [vmem:[#allocation7 + $0x10] sm:$0xff] }
  0x1b   :  { %188 = vmatpush.bf16.msra.mxu0 %v618_v1  ;;  %v623_v13 = vld [vmem:[#allocation7 + $0x18] sm:$0xff]  ;;  %v621_v15 = vld [vmem:[#allocation7 + $0x8] sm:$0xff]  ;;  %v620_v16 = vld [vmem:[#allocation7] sm:$0xff] }
  0x1c   :  { %273 = vmatpush.bf16.msra.mxu1 %v626_v3  ;;  %v635_v17 = vld [vmem:[#allocation8 + $0x38] sm:$0xff]  ;;  %v634_v18 = vld [vmem:[#allocation8 + $0x30] sm:$0xff]  ;;  %v633_v19 = vld [vmem:[#allocation8 + $0x28] sm:$0xff] }
  0x1d   :  { %357 = vmatpush.bf16.msra.mxu2 %v635_v17  ;;  %v632_v20 = vld [vmem:[#allocation8 + $0x20] sm:$0xff]  ;;  %v654_v22 = vld [vmem:[%s902_s2] ss:$0 sm:$0xff]  ;;  %v630_v30 = vld [vmem:[#allocation8 + $0x10] sm:$0xff] }
  0x1e   :  { %v631_v29 = vld [vmem:[#allocation8 + $0x18] sm:$0xff]  ;;  %v629_v31 = vld [vmem:[#allocation8 + $0x8] sm:$0xff]  ;;  %v628_v32 = vld [vmem:[#allocation8] sm:$0xff] }
  0x1f   :  { %189 = vmatpush.bf16.msra.mxu0 %v617_v4  ;;  %v643_v33 = vld [vmem:[#allocation10 + $0x38] sm:$0xff]  ;;  %v642_v34 = vld [vmem:[#allocation10 + $0x30] sm:$0xff]  ;;  %v641_v35 = vld [vmem:[#allocation10 + $0x28] sm:$0xff] }
  0x20   :  { %274 = vmatpush.bf16.msra.mxu1 %v625_v5  ;;  %442 = vmatpush.bf16.msra.mxu3 %v643_v33  ;;  %v640_v36 = vld [vmem:[#allocation10 + $0x20] sm:$0xff]  ;;  %v655_v38 = vld [vmem:[%s904_s4] ss:$0 sm:$0xff]  ;;  %v638_v46 = vld [vmem:[#allocation10 + $0x10] sm:$0xff] }
  0x21   :  { %358 = vmatpush.bf16.msra.mxu2 %v634_v18  ;;  %v639_v45 = vld [vmem:[#allocation10 + $0x18] sm:$0xff]  ;;  %v637_v47 = vld [vmem:[#allocation10 + $0x8] sm:$0xff]  ;;  %v636_v48 = vld [vmem:[#allocation10] sm:$0xff] }
  0x22   :  { %v656_v50 = vld [vmem:[%s906_s6] ss:$0 sm:$0xff]  ;;  %s464_s6 = sshll.u32 %s909_s9, 4  ;;  %s465_s6 = int_to_ptr.hbm [resolvable:$true] %s464_s6 }
  0x23   :  { %190 = vmatpush.bf16.msra.mxu0 %v616_v6  ;;  %v657_v57 = vld [vmem:[%s908_s8] ss:$0 sm:$0xff] }
  0x24   :  { %275 = vmatpush.bf16.msra.mxu1 %v624_v7  ;;  %443 = vmatpush.bf16.msra.mxu3 %v642_v34 }
  0x25   :  { %359 = vmatpush.bf16.msra.mxu2 %v633_v19 }
  0x27   :  { %191 = vmatpush.bf16.msra.mxu0 %v615_v8 }
  0x28   :  { %276 = vmatpush.bf16.msra.mxu1 %v623_v13  ;;  %444 = vmatpush.bf16.msra.mxu3 %v641_v35 }
  0x29   :  { %360 = vmatpush.bf16.msra.mxu2 %v632_v20 }
  0x2b   :  { %192 = vmatpush.bf16.msra.mxu0 %v614_v9 }
  0x2c   :  { %277 = vmatpush.bf16.msra.mxu1 %v622_v14  ;;  %445 = vmatpush.bf16.msra.mxu3 %v640_v36 }
  0x2d   :  { %361 = vmatpush.bf16.msra.mxu2 %v631_v29 }
  0x2f   :  { %193 = vmatpush.bf16.msra.mxu0 %v613_v10 }
  0x30   :  { %278 = vmatpush.bf16.msra.mxu1 %v621_v15  ;;  %446 = vmatpush.bf16.msra.mxu3 %v639_v45 }
  0x31   :  { %362 = vmatpush.bf16.msra.mxu2 %v630_v30 }
  0x33   :  { %194 = vmatpush.bf16.msra.mxu0 %v612_v11 }
  0x34   :  { %279 = vmatpush.bf16.msra.mxu1 %v620_v16  ;;  %447 = vmatpush.bf16.msra.mxu3 %v638_v46 }
  0x35   :  { %363 = vmatpush.bf16.msra.mxu2 %v629_v31 }
  0x36   :  { %195 = vmatmul.bf16.vlgmr.msra.gmra.mxu0 %v611_v12 }
  0x38   :  { %448 = vmatpush.bf16.msra.mxu3 %v637_v47 }
  0x39   :  { %364 = vmatpush.bf16.msra.mxu2 %v628_v32 }
  0x3c   :  { %449 = vmatpush.bf16.msra.mxu3 %v636_v48 }
  0xb3   :  { %v196_v21 = vpop.f32.mrf.mxu0 }
  0xb4   :  { %v197_v23 = vadd.f32 %v654_v22, %v196_v21 }
  0xb6   :  { %v201_v26 = vmax.f32 %v197_v23, 0.0 }
  0xbb   :  { %v198_v24 = vpop.f32.mrf.mxu0 }
  0xbc   :  { %v199_v25 = vadd.f32 %v654_v22, %v198_v24 }
  0xbe   :  { %v202_v27 = vmax.f32 %v199_v25, 0.0 }
  0xc0   :  { %v203_v28 = vpack.c.bf16 %v202_v27, %v201_v26 }
  0xc2   :  { %280 = vmatmul.bf16.vlgmr.msra.gmra.mxu1 %v203_v28 }
 0x13f   :  { %v281_v37 = vpop.f32.mrf.mxu1 }
 0x140   :  { %v282_v39 = vadd.f32 %v655_v38, %v281_v37 }
 0x142   :  { %v286_v42 = vmax.f32 %v282_v39, 0.0 }
 0x147   :  { %v283_v40 = vpop.f32.mrf.mxu1 }
 0x148   :  { %v284_v41 = vadd.f32 %v655_v38, %v283_v40 }
 0x14a   :  { %v287_v43 = vmax.f32 %v284_v41, 0.0 }
 0x14c   :  { %v288_v44 = vpack.c.bf16 %v287_v43, %v286_v42 }
 0x14e   :  { %365 = vmatmul.bf16.vlgmr.msra.gmra.mxu2 %v288_v44 }
 0x1d1   :  { %v366_v49 = vpop.f32.mrf.mxu2 }
 0x1d2   :  { %v367_v51 = vadd.f32 %v656_v50, %v366_v49 }
 0x1d4   :  { %v371_v54 = vmax.f32 %v367_v51, 0.0 }
 0x1d9   :  { %v368_v52 = vpop.f32.mrf.mxu2 }
 0x1da   :  { %v369_v53 = vadd.f32 %v656_v50, %v368_v52 }
 0x1dc   :  { %v372_v55 = vmax.f32 %v369_v53, 0.0 }
 0x1de   :  { %v373_v56 = vpack.c.bf16 %v372_v55, %v371_v54 }
 0x1e0   :  { %450 = vmatmul.bf16.vlgmr.msra.gmra.mxu3 %v373_v56 }
 0x263   :  { %v451_v58 = vpop.f32.mrf.mxu3 }
 0x264   :  { %v452_v59 = vadd.f32 %v657_v57, %v451_v58 }
 0x266   :  { %456 = vst [vmem:[#allocation11] sm:$0xff] %v452_v59 }
 0x26b   :  { %v453_v60 = vpop.f32.mrf.mxu3 }
 0x26c   :  { %v454_v61 = vadd.f32 %v657_v57, %v453_v60 }
 0x26e   :  { %457 = vst [vmem:[#allocation11 + $0x8] sm:$0xff] %v454_v61 }
 0x26f   :  { %470 = dma.vmem_to_hbm [thread:$0]  %s463_s17, 256, %s465_s6, [#allocation4], %s818_s20, %s818_s20, %s819_s21  }
 0x270   :  { %808 = dma.done.wait [#allocation4], 256  }
 0x271   :  { %809 = vsyncadd [#allocation4], 4294967040 }
 0x272   :  { %475 = vsyncpa [#allocation3], 1 }
 0x273   :  { %476 = vsyncpa [#allocation6], 1 }
 0x274   :  { %477 = vsyncpa [#allocation9], 1 }
 0x275   :  { %478 = vsyncpa [#allocation4], 1 }

// kernel: tpu_custom_call.1
= control target key start
LH: loop header
LB: loop body
LE: loop exit
PB: predicated region body
PF: predicated region fallthrough
CT: control target
= control target key end

     0   :  { %14 = vsyncpa [#allocation3], 0  ;;  %s900_s0 = inlined_call_operand.hbm [shape: bf16[16,128], index: 0, kind: input, shape index: {}]   ;;  %s901_s1 = inlined_call_operand.hbm [shape: bf16[128,128], index: 1, kind: input, shape index: {}]   ;;  %s902_s2 = inlined_call_operand.vmem [shape: f32[1,128], index: 2, kind: input, shape index: {}]   ;;  %s903_s3 = inlined_call_operand.hbm [shape: bf16[128,128], index: 3, kind: input, shape index: {}]   ;;  %s904_s4 = inlined_call_operand.vmem [shape: f32[1,128], index: 4, kind: input, shape index: {}]   ;;  %s905_s5 = inlined_call_operand.hbm [shape: bf16[128,128], index: 5, kind: input, shape index: {}]   ;;  %s906_s6 = inlined_call_operand.vmem [shape: f32[1,128], index: 6, kind: input, shape index: {}]   ;;  %s907_s7 = inlined_call_operand.hbm [shape: bf16[128,128], index: 7, kind: input, shape index: {}]   ;;  %s908_s8 = inlined_call_operand.vmem [shape: f32[1,128], index: 8, kind: input, shape index: {}]   ;;  %s909_s9 = inlined_call_operand.hbm [shape: f32[16,128], index: 9, kind: output, shape index: {}]  }
   0x1   :  { %15 = vsyncpa [#allocation6], 0 }
   0x2   :  { %16 = vsyncpa [#allocation9], 0 }
   0x3   :  { %17 = vsyncpa [#allocation4], 0  ;;  %s35_s11 = sshll.u32 %s901_s1, 4  ;;  %s810_s12 = smov [#allocation5]   ;;  %s36_s11 = int_to_ptr.hbm [resolvable:$true] %s35_s11 }
   0x4   :  { %s37_s13 = sshll.u32 %s810_s12, 4  ;;  %s65_s16 = sshll.u32 %s905_s5, 4  ;;  %s38_s13 = int_to_ptr.vmem [resolvable:$true] %s37_s13  ;;  %s66_s16 = int_to_ptr.hbm [resolvable:$true] %s65_s16 }
   0x5   :  { %s811_s17 = smov 64   ;;  %s812_s18 = smov 4  }
   0x6   :  { %43 = dma.hbm_to_vmem [thread:$0]  %s36_s11, 1024, %s38_s13, [#allocation6], %s811_s17, %s811_s17, %s812_s18  }
   0x7   :  { %s813_s19 = smov [#allocation8]   ;;  %s22_s23 = sshll.u32 %s900_s0, 4  ;;  %s23_s23 = int_to_ptr.hbm [resolvable:$true] %s22_s23 }
   0x8   :  { %s67_s20 = sshll.u32 %s813_s19, 4  ;;  %s50_s25 = sshll.u32 %s903_s3, 4  ;;  %s68_s20 = int_to_ptr.vmem [resolvable:$true] %s67_s20  ;;  %s51_s25 = int_to_ptr.hbm [resolvable:$true] %s50_s25 }
   0x9   :  { %73 = dma.hbm_to_vmem [thread:$0]  %s66_s16, 1024, %s68_s20, [#allocation9], %s811_s17, %s811_s17, %s812_s18  }
   0xa   :  { %s814_s26 = smov [#allocation2]   ;;  %s815_s5 = smov [#allocation7]  }
   0xb   :  { %s24_s27 = sshll.u32 %s814_s26, 4  ;;  %s52_s28 = sshll.u32 %s815_s5, 4  ;;  %s25_s27 = int_to_ptr.vmem [resolvable:$true] %s24_s27  ;;  %s53_s28 = int_to_ptr.vmem [resolvable:$true] %s52_s28 }
   0xc   :  { %30 = dma.hbm_to_vmem [thread:$0]  %s23_s23, 128, %s25_s27, [#allocation3], %s811_s17, %s811_s17, %s812_s18  }
   0xd   :  { %s80_s10 = sshll.u32 %s907_s7, 4  ;;  %s816_s0 = smov [#allocation10]   ;;  %s81_s10 = int_to_ptr.hbm [resolvable:$true] %s80_s10 }
   0xe   :  { %58 = dma.hbm_to_vmem [thread:$0]  %s51_s25, 1024, %s53_s28, [#allocation6], %s811_s17, %s811_s17, %s812_s18  }
   0xf   :  { %s82_s11 = sshll.u32 %s816_s0, 4  ;;  %s83_s11 = int_to_ptr.vmem [resolvable:$true] %s82_s11 }
  0x10   :  { %88 = dma.hbm_to_vmem [thread:$0]  %s81_s10, 1024, %s83_s11, [#allocation9], %s811_s17, %s811_s17, %s812_s18  }
  0x11   :  { %802 = dma.done.wait [#allocation3], 128  }
  0x12   :  { %803 = vsyncadd [#allocation3], 4294967168 }
  0x13   :  { %804 = dma.done.wait [#allocation6], 2048  }
  0x14   :  { %805 = vsyncadd [#allocation6], 4294965248 }
  0x15   :  { %806 = dma.done.wait [#allocation9], 2048  }
  0x16   :  { %807 = vsyncadd [#allocation9], 4294965248  ;;  %v619_v0 = vld [vmem:[#allocation5 + $0x38] sm:$0xff]  ;;  %v618_v1 = vld [vmem:[#allocation5 + $0x30] sm:$0xff]  ;;  %s817_s16 = smov [#allocation11]   ;;  %s818_s20 = smov 128  }
  0x17   :  { %187 = vmatpush.bf16.msra.mxu0 %v619_v0  ;;  %v627_v2 = vld [vmem:[#allocation7 + $0x38] sm:$0xff]  ;;  %v626_v3 = vld [vmem:[#allocation7 + $0x30] sm:$0xff]  ;;  %v617_v4 = vld [vmem:[#allocation5 + $0x28] sm:$0xff]  ;;  %s462_s17 = sshll.u32 %s817_s16, 4  ;;  %s819_s21 = smov 8   ;;  %s463_s17 = int_to_ptr.vmem [resolvable:$true] %s462_s17 }
  0x18   :  { %272 = vmatpush.bf16.msra.mxu1 %v627_v2  ;;  %v625_v5 = vld [vmem:[#allocation7 + $0x28] sm:$0xff]  ;;  %v616_v6 = vld [vmem:[#allocation5 + $0x20] sm:$0xff]  ;;  %v615_v8 = vld [vmem:[#allocation5 + $0x18] sm:$0xff] }
  0x19   :  { %v624_v7 = vld [vmem:[#allocation7 + $0x20] sm:$0xff]  ;;  %v614_v9 = vld [vmem:[#allocation5 + $0x10] sm:$0xff]  ;;  %v613_v10 = vld [vmem:[#allocation5 + $0x8] sm:$0xff] }
  0x1a   :  { %v612_v11 = vld [vmem:[#allocation5] sm:$0xff]  ;;  %v611_v12 = vld [vmem:[#allocation2] sm:$0xff]  ;;  %v622_v14 = vld [vmem:[#allocation7 + $0x10] sm:$0xff] }
  0x1b   :  { %188 = vmatpush.bf16.msra.mxu0 %v618_v1  ;;  %v623_v13 = vld [vmem:[#allocation7 + $0x18] sm:$0xff]  ;;  %v621_v15 = vld [vmem:[#allocation7 + $0x8] sm:$0xff]  ;;  %v620_v16 = vld [vmem:[#allocation7] sm:$0xff] }
  0x1c   :  { %273 = vmatpush.bf16.msra.mxu1 %v626_v3  ;;  %v635_v17 = vld [vmem:[#allocation8 + $0x38] sm:$0xff]  ;;  %v634_v18 = vld [vmem:[#allocation8 + $0x30] sm:$0xff]  ;;  %v633_v19 = vld [vmem:[#allocation8 + $0x28] sm:$0xff] }
  0x1d   :  { %357 = vmatpush.bf16.msra.mxu2 %v635_v17  ;;  %v632_v20 = vld [vmem:[#allocation8 + $0x20] sm:$0xff]  ;;  %v654_v22 = vld [vmem:[%s902_s2] ss:$0 sm:$0xff]  ;;  %v630_v30 = vld [vmem:[#allocation8 + $0x10] sm:$0xff] }
  0x1e   :  { %v631_v29 = vld [vmem:[#allocation8 + $0x18] sm:$0xff]  ;;  %v629_v31 = vld [vmem:[#allocation8 + $0x8] sm:$0xff]  ;;  %v628_v32 = vld [vmem:[#allocation8] sm:$0xff] }
  0x1f   :  { %189 = vmatpush.bf16.msra.mxu0 %v617_v4  ;;  %v643_v33 = vld [vmem:[#allocation10 + $0x38] sm:$0xff]  ;;  %v642_v34 = vld [vmem:[#allocation10 + $0x30] sm:$0xff]  ;;  %v641_v35 = vld [vmem:[#allocation10 + $0x28] sm:$0xff] }
  0x20   :  { %274 = vmatpush.bf16.msra.mxu1 %v625_v5  ;;  %442 = vmatpush.bf16.msra.mxu3 %v643_v33  ;;  %v640_v36 = vld [vmem:[#allocation10 + $0x20] sm:$0xff]  ;;  %v655_v38 = vld [vmem:[%s904_s4] ss:$0 sm:$0xff]  ;;  %v638_v46 = vld [vmem:[#allocation10 + $0x10] sm:$0xff] }
  0x21   :  { %358 = vmatpush.bf16.msra.mxu2 %v634_v18  ;;  %v639_v45 = vld [vmem:[#allocation10 + $0x18] sm:$0xff]  ;;  %v637_v47 = vld [vmem:[#allocation10 + $0x8] sm:$0xff]  ;;  %v636_v48 = vld [vmem:[#allocation10] sm:$0xff] }
  0x22   :  { %v656_v50 = vld [vmem:[%s906_s6] ss:$0 sm:$0xff]  ;;  %s464_s6 = sshll.u32 %s909_s9, 4  ;;  %s465_s6 = int_to_ptr.hbm [resolvable:$true] %s464_s6 }
  0x23   :  { %190 = vmatpush.bf16.msra.mxu0 %v616_v6  ;;  %v657_v57 = vld [vmem:[%s908_s8] ss:$0 sm:$0xff] }
  0x24   :  { %275 = vmatpush.bf16.msra.mxu1 %v624_v7  ;;  %443 = vmatpush.bf16.msra.mxu3 %v642_v34 }
  0x25   :  { %359 = vmatpush.bf16.msra.mxu2 %v633_v19 }
  0x27   :  { %191 = vmatpush.bf16.msra.mxu0 %v615_v8 }
  0x28   :  { %276 = vmatpush.bf16.msra.mxu1 %v623_v13  ;;  %444 = vmatpush.bf16.msra.mxu3 %v641_v35 }
  0x29   :  { %360 = vmatpush.bf16.msra.mxu2 %v632_v20 }
  0x2b   :  { %192 = vmatpush.bf16.msra.mxu0 %v614_v9 }
  0x2c   :  { %277 = vmatpush.bf16.msra.mxu1 %v622_v14  ;;  %445 = vmatpush.bf16.msra.mxu3 %v640_v36 }
  0x2d   :  { %361 = vmatpush.bf16.msra.mxu2 %v631_v29 }
  0x2f   :  { %193 = vmatpush.bf16.msra.mxu0 %v613_v10 }
  0x30   :  { %278 = vmatpush.bf16.msra.mxu1 %v621_v15  ;;  %446 = vmatpush.bf16.msra.mxu3 %v639_v45 }
  0x31   :  { %362 = vmatpush.bf16.msra.mxu2 %v630_v30 }
  0x33   :  { %194 = vmatpush.bf16.msra.mxu0 %v612_v11 }
  0x34   :  { %279 = vmatpush.bf16.msra.mxu1 %v620_v16  ;;  %447 = vmatpush.bf16.msra.mxu3 %v638_v46 }
  0x35   :  { %363 = vmatpush.bf16.msra.mxu2 %v629_v31 }
  0x36   :  { %195 = vmatmul.bf16.vlgmr.msra.gmra.mxu0 %v611_v12 }
  0x38   :  { %448 = vmatpush.bf16.msra.mxu3 %v637_v47 }
  0x39   :  { %364 = vmatpush.bf16.msra.mxu2 %v628_v32 }
  0x3c   :  { %449 = vmatpush.bf16.msra.mxu3 %v636_v48 }
  0xb3   :  { %v196_v21 = vpop.f32.mrf.mxu0 }
  0xb4   :  { %v197_v23 = vadd.f32 %v654_v22, %v196_v21 }
  0xb6   :  { %v201_v26 = vmax.f32 %v197_v23, 0.0 }
  0xbb   :  { %v198_v24 = vpop.f32.mrf.mxu0 }
  0xbc   :  { %v199_v25 = vadd.f32 %v654_v22, %v198_v24 }
  0xbe   :  { %v202_v27 = vmax.f32 %v199_v25, 0.0 }
  0xc0   :  { %v203_v28 = vpack.c.bf16 %v202_v27, %v201_v26 }
  0xc2   :  { %280 = vmatmul.bf16.vlgmr.msra.gmra.mxu1 %v203_v28 }
 0x13f   :  { %v281_v37 = vpop.f32.mrf.mxu1 }
 0x140   :  { %v282_v39 = vadd.f32 %v655_v38, %v281_v37 }
 0x142   :  { %v286_v42 = vmax.f32 %v282_v39, 0.0 }
 0x147   :  { %v283_v40 = vpop.f32.mrf.mxu1 }
 0x148   :  { %v284_v41 = vadd.f32 %v655_v38, %v283_v40 }
 0x14a   :  { %v287_v43 = vmax.f32 %v284_v41, 0.0 }
 0x14c   :  { %v288_v44 = vpack.c.bf16 %v287_v43, %v286_v42 }
 0x14e   :  { %365 = vmatmul.bf16.vlgmr.msra.gmra.mxu2 %v288_v44 }
 0x1d1   :  { %v366_v49 = vpop.f32.mrf.mxu2 }
 0x1d2   :  { %v367_v51 = vadd.f32 %v656_v50, %v366_v49 }
 0x1d4   :  { %v371_v54 = vmax.f32 %v367_v51, 0.0 }
 0x1d9   :  { %v368_v52 = vpop.f32.mrf.mxu2 }
 0x1da   :  { %v369_v53 = vadd.f32 %v656_v50, %v368_v52 }
 0x1dc   :  { %v372_v55 = vmax.f32 %v369_v53, 0.0 }
 0x1de   :  { %v373_v56 = vpack.c.bf16 %v372_v55, %v371_v54 }
 0x1e0   :  { %450 = vmatmul.bf16.vlgmr.msra.gmra.mxu3 %v373_v56 }
 0x263   :  { %v451_v58 = vpop.f32.mrf.mxu3 }
 0x264   :  { %v452_v59 = vadd.f32 %v657_v57, %v451_v58 }
 0x266   :  { %456 = vst [vmem:[#allocation11] sm:$0xff] %v452_v59 }
 0x26b   :  { %v453_v60 = vpop.f32.mrf.mxu3 }
 0x26c   :  { %v454_v61 = vadd.f32 %v657_v57, %v453_v60 }
 0x26e   :  { %457 = vst [vmem:[#allocation11 + $0x8] sm:$0xff] %v454_v61 }
 0x26f   :  { %470 = dma.vmem_to_hbm [thread:$0]  %s463_s17, 256, %s465_s6, [#allocation4], %s818_s20, %s818_s20, %s819_s21  }
 0x270   :  { %808 = dma.done.wait [#allocation4], 256  }
 0x271   :  { %809 = vsyncadd [#allocation4], 4294967040 }
 0x272   :  { %475 = vsyncpa [#allocation3], 1 }
 0x273   :  { %476 = vsyncpa [#allocation6], 1 }
 0x274   :  { %477 = vsyncpa [#allocation9], 1 }
 0x275   :  { %478 = vsyncpa [#allocation4], 1 }

</bundles_post_ra>
